<compile_context>
chip_gen: v6e
topology: v6e:2x2x1
jax: 0.10.0
libtpu: 0.0.40
codegen_flags: <defaults>
</compile_context>

<pallas_src>
import functools

import jax
import jax.numpy as jnp
from jax import lax
from jax.experimental import pallas as pl
from jax.experimental.pallas import tpu as pltpu

BN_EPS = 1e-5  # nn.BatchNorm2d default


# ----------------------------- kernels ------------------------------------ #

def _stats_kernel(x_ref, w_ref, stats_ref, *, tm, m_total, need_mask):
    """Phase A: per-tile matmul (bf16 in, f32 acc) + per-tile BN partial stats.

    x_ref:     (tm, Cin)    bf16 input rows for this tile (zero-padded past m_total)
    w_ref:     (Cin, Npad)  bf16 tap-packed weights (col = (kh*2+kw)*Cout + c)
    stats_ref: (1, 2, Npad) f32: row 0 = per-tile sum, row 1 = centered sum-of-squares
    """
    y = jnp.dot(x_ref[...], w_ref[...], preferred_element_type=jnp.float32)
    i = pl.program_id(0)
    rows = jnp.minimum(tm, m_total - i * tm).astype(jnp.float32)  # real rows in tile
    # Padded rows of x are exact zeros -> they contribute nothing to the sum.
    s = jnp.sum(y, axis=0, keepdims=True)                          # (1, Npad)
    mean_i = s * (1.0 / rows)
    d = y - mean_i
    if need_mask:  # only generated when the grid is ragged (static)
        rid = lax.broadcasted_iota(jnp.int32, y.shape, 0)
        d = jnp.where(rid < (m_total - i * tm), d, 0.0)
    q = jnp.sum(d * d, axis=0, keepdims=True)                      # centered sumsq
    # Direct slice stores (no concat/reshape relayout of a 2-sublane block).
    stats_ref[:, 0:1, :] = s[:, None, :]
    stats_ref[:, 1:2, :] = q[:, None, :]


def _matmul_bn_relu_kernel(x_ref, w_ref, scale_ref, shift_ref, o_ref):
    """Phase B: recompute the tile matmul, apply y*scale + shift, ReLU."""
    y = jnp.dot(x_ref[...], w_ref[...], preferred_element_type=jnp.float32)
    o_ref[...] = jnp.maximum(y * scale_ref[...] + shift_ref[...], 0.0)


# --------------------------- tiling helpers -------------------------------- #

def _vmem_limit_bytes():
    """3/4 of physical per-core VMEM (96 MiB on v5e/v6e, 48 MiB on v7x)."""
    cap = 128 * 1024 * 1024
    try:
        cap = int(getattr(pltpu.get_tpu_info(), "vmem_capacity_bytes", cap))
    except Exception:  # e.g. interpret mode / query unavailable
        pass
    return min((cap * 3) // 4, 96 * 1024 * 1024)


def _choose_tile(m, cin, npad, vmem_limit):
    """Largest tm (multiple of 8) whose double-buffered phase-B footprint fits."""
    budget = vmem_limit - (2 << 20)                     # headroom for internal scratch
    fixed = 2 * cin * npad * 2 + 4 * npad * 4           # w (2 bufs bf16) + scale/shift
    per_row = 2 * (cin * 2 + npad * 4)                  # x bf16 + out f32, 2 bufs each
    tm = (budget - fixed) // per_row if budget > fixed else 8
    hard_cap = 4096 if npad <= 256 else 2048            # bigger blocks when lanes are few
    tm = min(int(tm), hard_cap)
    # Keep >= ~4 grid steps: pipelining + v7x 2-TensorCore sharding of the parallel axis.
    tm = min(tm, max(8, -(-m // 4)))
    return max(8, (tm // 8) * 8)


# ------------------------------ wrapper ------------------------------------ #

@jax.jit
def generator_block(x_nchw, w_ct, b_ct, gamma, beta):
    """x_nchw: (B, Cin, H, W); w_ct: (Cin, Cout, 2, 2) (PyTorch ConvTranspose2d layout).

    b_ct is accepted for API parity but unused: the conv bias cancels exactly under
    training-mode BatchNorm mean subtraction.  Valid only for k=2, s=2, padding=0.
    """
    del b_ct  # cancels under batch-norm mean subtraction (train mode)
    B, Cin, H, W = x_nchw.shape
    Cout = w_ct.shape[1]
    M = B * H * W
    N = 4 * Cout
    Npad = ((N + 127) // 128) * 128          # lane-dense packed width

    vmem_limit = _vmem_limit_bytes()
    tm = _choose_tile(M, Cin, Npad, vmem_limit)
    num_tiles = pl.cdiv(M, tm)
    M_pad = num_tiles * tm

    # ----- layout prep (plain XLA): rows = (b, h, w), bf16 for the MXU -----
    x_flat = jnp.transpose(x_nchw, (0, 2, 3, 1)).reshape(M, Cin).astype(jnp.bfloat16)
    if M_pad != M:
        x_flat = jnp.pad(x_flat, ((0, M_pad - M), (0, 0)))
    # (Cin, Cout, kh, kw) -> (Cin, kh, kw, Cout) -> (Cin, 4*Cout); col = (kh*2+kw)*Cout + c
    w_packed = jnp.transpose(w_ct, (0, 2, 3, 1)).reshape(Cin, N)
    w_packed = jnp.pad(w_packed, ((0, 0), (0, Npad - N))).astype(jnp.bfloat16)

    cparams = pltpu.CompilerParams(dimension_semantics=("parallel",),
                                   vmem_limit_bytes=vmem_limit)

    # ----- phase A: per-tile matmul + partial BN stats (tiny output only) -----
    stats = pl.pallas_call(
        functools.partial(_stats_kernel, tm=tm, m_total=M, need_mask=(M_pad != M)),
        out_shape=jax.ShapeDtypeStruct((num_tiles, 2, Npad), jnp.float32),
        grid=(num_tiles,),
        in_specs=[
            pl.BlockSpec((tm, Cin), lambda i: (i, 0)),
            pl.BlockSpec((Cin, Npad), lambda i: (0, 0)),
        ],
        out_specs=pl.BlockSpec((1, 2, Npad), lambda i: (i, 0, 0)),
        compiler_params=cparams,
    )(x_flat, w_packed)

    # ----- BN batch-stats combine (tiny, plain JAX): Chan's parallel variance -----
    s_all = stats[:, 0, :N].reshape(num_tiles, 4, Cout)   # per-(tile, tap) sums
    q_all = stats[:, 1, :N].reshape(num_tiles, 4, Cout)   # per-(tile, tap) centered sumsq
    rows = jnp.minimum(tm, M - tm * jnp.arange(num_tiles)).astype(jnp.float32)  # (T,)
    count = jnp.float32(4 * M)
    mean = jnp.sum(s_all, axis=(0, 1)) / count                         # (Cout,)
    tile_mean = s_all / rows[:, None, None]
    m2 = jnp.sum(q_all, axis=(0, 1)) + jnp.sum(
        rows[:, None, None] * (tile_mean - mean[None, None, :]) ** 2, axis=(0, 1))
    var = m2 / count                                                    # biased (train-mode BN)
    inv_std = lax.rsqrt(var + BN_EPS)
    scale_c = gamma.astype(jnp.float32) * inv_std                       # (Cout,)
    shift_c = beta.astype(jnp.float32) - mean * scale_c
    scale_packed = jnp.pad(jnp.tile(scale_c, 4), (0, Npad - N)).reshape(1, Npad)
    shift_packed = jnp.pad(jnp.tile(shift_c, 4), (0, Npad - N)).reshape(1, Npad)

    # ----- phase B: recompute matmul + normalize + ReLU (no pre-BN intermediate) -----
    out_packed = pl.pallas_call(
        _matmul_bn_relu_kernel,
        out_shape=jax.ShapeDtypeStruct((M_pad, Npad), jnp.float32),
        grid=(num_tiles,),
        in_specs=[
            pl.BlockSpec((tm, Cin), lambda i: (i, 0)),
            pl.BlockSpec((Cin, Npad), lambda i: (0, 0)),
            pl.BlockSpec((1, Npad), lambda i: (0, 0)),
            pl.BlockSpec((1, Npad), lambda i: (0, 0)),
        ],
        out_specs=pl.BlockSpec((tm, Npad), lambda i: (i, 0)),
        compiler_params=cparams,
    )(x_flat, w_packed, scale_packed, shift_packed)

    # ----- tap scatter: single transpose straight to NCHW (PyTorch parity) -----
    # out_packed[b*H*W + h*W + w, (kh*2+kw)*Cout + c] -> y[b, c, 2h+kh, 2w+kw]
    out6 = out_packed[:M, :N].reshape(B, H, W, 2, 2, Cout)       # (b, h, w, kh, kw, c)
    out = jnp.transpose(out6, (0, 5, 1, 3, 2, 4)).reshape(B, Cout, 2 * H, 2 * W)
    return out


# ------------------------------ reference ---------------------------------- #

def _reference(x_nchw, w_ct, b_ct, gamma, beta):
    """Pure-JAX f32 reference of the PyTorch forward (training-mode BatchNorm)."""
    B, Cin, H, W = x_nchw.shape
    Cout = w_ct.shape[1]
    y = jnp.zeros((B, Cout, 2 * H, 2 * W), jnp.float32)
    for kh in range(2):
        for kw in range(2):
            contrib = jnp.einsum("bihw,io->bohw", x_nchw, w_ct[:, :, kh, kw])
            contrib = contrib + b_ct[None, :, None, None]
            y = y.at[:, :, kh::2, kw::2].set(contrib)
    mean = jnp.mean(y, axis=(0, 2, 3), keepdims=True)
    var = jnp.mean((y - mean) ** 2, axis=(0, 2, 3), keepdims=True)  # biased
    yn = (y - mean) / jnp.sqrt(var + BN_EPS)
    yn = yn * gamma[None, :, None, None] + beta[None, :, None, None]
    return jnp.maximum(yn, 0.0)


if __name__ == "__main__":
    B, in_ch, out_ch, H, W = 2, 4, 8, 16, 16

    key = jax.random.PRNGKey(0)
    kx, kw, kb, kg, kbe = jax.random.split(key, 5)

    x = jax.random.normal(kx, (B, in_ch, H, W), jnp.float32)
    # ConvTranspose2d weight shape: (in_ch, out_ch, kH, kW)
    w_ct = jax.random.normal(kw, (in_ch, out_ch, 2, 2), jnp.float32) * 0.2
    b_ct = jax.random.normal(kb, (out_ch,), jnp.float32) * 0.1
    gamma = 1.0 + 0.1 * jax.random.normal(kg, (out_ch,), jnp.float32)
    beta = 0.1 * jax.random.normal(kbe, (out_ch,), jnp.float32)

    out = jax.block_until_ready(generator_block(x, w_ct, b_ct, gamma, beta))
    assert out.shape == (B, out_ch, 2 * H, 2 * W)

    # Tight check: reference fed the same bf16-rounded matmul inputs (isolates the
    # kernel pipeline from the deliberate bf16 input quantization).
    ref_bf16 = _reference(x.astype(jnp.bfloat16).astype(jnp.float32),
                          w_ct.astype(jnp.bfloat16).astype(jnp.float32),
                          b_ct, gamma, beta)
    assert jnp.allclose(out, ref_bf16, rtol=1e-3, atol=1e-3), "mismatch vs bf16-input ref"

    # Loose check: true f32 PyTorch semantics (bf16 matmul inputs cost ~1e-3..1e-2 abs).
    ref_f32 = _reference(x, w_ct, b_ct, gamma, beta)
    assert jnp.allclose(out, ref_f32, rtol=5e-2, atol=5e-2), "mismatch vs f32 reference"

    print("KERNEL_OK")
</pallas_src>

<mosaic_0001>
module attributes {stable_mosaic.version = 11 : i64} {
  func.func @_stats_kernel(%arg0: i32, %arg1: memref<128x4xbf16, #tpu.memory_space<vmem>>, %arg2: memref<4x128xbf16, #tpu.memory_space<vmem>>, %arg3: memref<1x2x128xf32, #tpu.memory_space<vmem>>) attributes {dimension_semantics = [#tpu.dimension_semantics<parallel>], iteration_bounds = array<i64: 4>, scalar_prefetch = 0 : i64, scratch_operands = 0 : i64, tpu.core_type = #tpu.core_type<tc>, window_params = [{transform_indices = @transform_0, window_bounds = array<i64: 128, 4>}, {pipeline_mode = #tpu.pipeline_mode<synchronous>, transform_indices = @transform_1, window_bounds = array<i64: 4, 128>}, {transform_indices = @transform_2, window_bounds = array<i64: 1, 2, 128>}]} {
    %c0 = arith.constant 0 : index
    %c0_0 = arith.constant 0 : index
    %0 = vector.load %arg1[%c0, %c0_0] : memref<128x4xbf16, #tpu.memory_space<vmem>>, vector<128x4xbf16>
    %c0_1 = arith.constant 0 : index
    %c0_2 = arith.constant 0 : index
    %1 = vector.load %arg2[%c0_1, %c0_2] : memref<4x128xbf16, #tpu.memory_space<vmem>>, vector<4x128xbf16>
    %cst = arith.constant dense<0.000000e+00> : vector<128x128xf32>
    %2 = tpu.matmul %0, %1, %cst {dimension_numbers = #tpu.dot_dimension_numbers<[1], [0], [0], [1], [0, 0, 1, 1], [], []>} : vector<128x4xbf16>, vector<4x128xbf16>, vector<128x128xf32> -> vector<128x128xf32>
    %c128_i32 = arith.constant 128 : i32
    %3 = arith.muli %arg0, %c128_i32 : i32
    %c512_i32 = arith.constant 512 : i32
    %4 = arith.subi %c512_i32, %3 : i32
    %c128_i32_3 = arith.constant 128 : i32
    %5 = arith.minsi %c128_i32_3, %4 : i32
    %6 = arith.sitofp %5 : i32 to f32
    %cst_4 = arith.constant dense<0.000000e+00> : vector<128xf32>
    %7 = vector.multi_reduction <add>, %2, %cst_4 [0] : vector<128x128xf32> to vector<128xf32>
    %8 = vector.shape_cast %7 : vector<128xf32> to vector<1x128xf32>
    %cst_5 = arith.constant 1.000000e+00 : f32
    %9 = arith.divf %cst_5, %6 : f32
    %10 = vector.broadcast %9 : f32 to vector<1x128xf32>
    %11 = arith.mulf %8, %10 : vector<1x128xf32>
    %12 = vector.broadcast %11 : vector<1x128xf32> to vector<128x128xf32>
    %13 = arith.subf %2, %12 : vector<128x128xf32>
    %14 = arith.mulf %13, %13 : vector<128x128xf32>
    %cst_6 = arith.constant dense<0.000000e+00> : vector<128xf32>
    %15 = vector.multi_reduction <add>, %14, %cst_6 [0] : vector<128x128xf32> to vector<128xf32>
    %16 = vector.shape_cast %15 : vector<128xf32> to vector<1x128xf32>
    %17 = vector.shape_cast %8 : vector<1x128xf32> to vector<1x1x128xf32>
    %c0_7 = arith.constant 0 : index
    %c0_8 = arith.constant 0 : index
    %c0_9 = arith.constant 0 : index
    %18 = vector.load %arg3[%c0_7, %c0_8, %c0_9] : memref<1x2x128xf32, #tpu.memory_space<vmem>>, vector<1x1x128xf32>
    tpu.vector_store %arg3[%c0_7, %c0_8, %c0_9], %17 {strides = array<i32>} : memref<1x2x128xf32, #tpu.memory_space<vmem>>, vector<1x1x128xf32>,
    %19 = vector.shape_cast %16 : vector<1x128xf32> to vector<1x1x128xf32>
    %c0_10 = arith.constant 0 : index
    %c1 = arith.constant 1 : index
    %c0_11 = arith.constant 0 : index
    %20 = vector.load %arg3[%c0_10, %c1, %c0_11] : memref<1x2x128xf32, #tpu.memory_space<vmem>>, vector<1x1x128xf32>
    tpu.vector_store %arg3[%c0_10, %c1, %c0_11], %19 {strides = array<i32>} : memref<1x2x128xf32, #tpu.memory_space<vmem>>, vector<1x1x128xf32>,
    return
  }
  func.func @transform_0(%arg0: i32) -> (i32, i32) {
    %c0_i32 = arith.constant 0 : i32
    %c0_i32_0 = arith.constant 0 : i32
    return %arg0, %c0_i32 : i32, i32
  }
  func.func @transform_1(%arg0: i32) -> (i32, i32) {
    %c0_i32 = arith.constant 0 : i32
    %c0_i32_0 = arith.constant 0 : i32
    %c0_i32_1 = arith.constant 0 : i32
    return %c0_i32, %c0_i32_0 : i32, i32
  }
  func.func @transform_2(%arg0: i32) -> (i32, i32, i32) {
    %c0_i32 = arith.constant 0 : i32
    %c0_i32_0 = arith.constant 0 : i32
    %c0_i32_1 = arith.constant 0 : i32
    return %arg0, %c0_i32, %c0_i32_0 : i32, i32, i32
  }
}

module attributes {stable_mosaic.version = 11 : i64} {
  func.func @_matmul_bn_relu_kernel(%arg0: i32, %arg1: memref<128x4xbf16, #tpu.memory_space<vmem>>, %arg2: memref<4x128xbf16, #tpu.memory_space<vmem>>, %arg3: memref<1x128xf32, #tpu.memory_space<vmem>>, %arg4: memref<1x128xf32, #tpu.memory_space<vmem>>, %arg5: memref<128x128xf32, #tpu.memory_space<vmem>>) attributes {dimension_semantics = [#tpu.dimension_semantics<parallel>], iteration_bounds = array<i64: 4>, scalar_prefetch = 0 : i64, scratch_operands = 0 : i64, tpu.core_type = #tpu.core_type<tc>, window_params = [{transform_indices = @transform_0, window_bounds = array<i64: 128, 4>}, {pipeline_mode = #tpu.pipeline_mode<synchronous>, transform_indices = @transform_1, window_bounds = array<i64: 4, 128>}, {pipeline_mode = #tpu.pipeline_mode<synchronous>, transform_indices = @transform_2, window_bounds = array<i64: 1, 128>}, {pipeline_mode = #tpu.pipeline_mode<synchronous>, transform_indices = @transform_3, window_bounds = array<i64: 1, 128>}, {transform_indices = @transform_4, window_bounds = array<i64: 128, 128>}]} {
    %c0 = arith.constant 0 : index
    %c0_0 = arith.constant 0 : index
    %0 = vector.load %arg1[%c0, %c0_0] : memref<128x4xbf16, #tpu.memory_space<vmem>>, vector<128x4xbf16>
    %c0_1 = arith.constant 0 : index
    %c0_2 = arith.constant 0 : index
    %1 = vector.load %arg2[%c0_1, %c0_2] : memref<4x128xbf16, #tpu.memory_space<vmem>>, vector<4x128xbf16>
    %cst = arith.constant dense<0.000000e+00> : vector<128x128xf32>
    %2 = tpu.matmul %0, %1, %cst {dimension_numbers = #tpu.dot_dimension_numbers<[1], [0], [0], [1], [0, 0, 1, 1], [], []>} : vector<128x4xbf16>, vector<4x128xbf16>, vector<128x128xf32> -> vector<128x128xf32>
    %c0_3 = arith.constant 0 : index
    %c0_4 = arith.constant 0 : index
    %3 = vector.load %arg3[%c0_3, %c0_4] : memref<1x128xf32, #tpu.memory_space<vmem>>, vector<1x128xf32>
    %4 = vector.broadcast %3 : vector<1x128xf32> to vector<128x128xf32>
    %5 = arith.mulf %2, %4 : vector<128x128xf32>
    %c0_5 = arith.constant 0 : index
    %c0_6 = arith.constant 0 : index
    %6 = vector.load %arg4[%c0_5, %c0_6] : memref<1x128xf32, #tpu.memory_space<vmem>>, vector<1x128xf32>
    %7 = vector.broadcast %6 : vector<1x128xf32> to vector<128x128xf32>
    %8 = arith.addf %5, %7 : vector<128x128xf32>
    %cst_7 = arith.constant 0.000000e+00 : f32
    %9 = vector.broadcast %cst_7 : f32 to vector<128x128xf32>
    %10 = arith.maximumf %8, %9 : vector<128x128xf32>
    %c0_8 = arith.constant 0 : index
    %c0_9 = arith.constant 0 : index
    %11 = vector.load %arg5[%c0_8, %c0_9] : memref<128x128xf32, #tpu.memory_space<vmem>>, vector<128x128xf32>
    tpu.vector_store %arg5[%c0_8, %c0_9], %10 {strides = array<i32>} : memref<128x128xf32, #tpu.memory_space<vmem>>, vector<128x128xf32>,
    return
  }
  func.func @transform_0(%arg0: i32) -> (i32, i32) {
    %c0_i32 = arith.constant 0 : i32
    %c0_i32_0 = arith.constant 0 : i32
    return %arg0, %c0_i32 : i32, i32
  }
  func.func @transform_1(%arg0: i32) -> (i32, i32) {
    %c0_i32 = arith.constant 0 : i32
    %c0_i32_0 = arith.constant 0 : i32
    %c0_i32_1 = arith.constant 0 : i32
    return %c0_i32, %c0_i32_0 : i32, i32
  }
  func.func @transform_2(%arg0: i32) -> (i32, i32) {
    %c0_i32 = arith.constant 0 : i32
    %c0_i32_0 = arith.constant 0 : i32
    %c0_i32_1 = arith.constant 0 : i32
    return %c0_i32, %c0_i32_0 : i32, i32
  }
  func.func @transform_3(%arg0: i32) -> (i32, i32) {
    %c0_i32 = arith.constant 0 : i32
    %c0_i32_0 = arith.constant 0 : i32
    %c0_i32_1 = arith.constant 0 : i32
    return %c0_i32, %c0_i32_0 : i32, i32
  }
  func.func @transform_4(%arg0: i32) -> (i32, i32) {
    %c0_i32 = arith.constant 0 : i32
    %c0_i32_0 = arith.constant 0 : i32
    return %arg0, %c0_i32 : i32, i32
  }
}

</mosaic_0001>

<bundles_post_ra>
// kernel: generator_block.2
= control target key start
LH: loop header
LB: loop body
LE: loop exit
PB: predicated region body
PF: predicated region fallthrough
CT: control target
= control target key end

     0   :  { %s568_s9 = smov 0   ;;  %s614_s0 = inlined_call_operand.vmem [shape: bf16[512,4], index: 0, kind: input, shape index: {}]   ;;  %s615_s1 = inlined_call_operand.vmem [shape: bf16[4,128], index: 1, kind: input, shape index: {}]   ;;  %s616_s2 = inlined_call_operand.vmem [shape: f32[4,2,128], index: 2, kind: output, shape index: {}]  }
   0x1 LB: > { %s574_s10 = sadd.s32 4294967295, %s551_s9   ;;  %p471_p0 = scmp.ge.s32.totalorder %s551_s9, 1  ;;  %s551_s9 = sphi %s568_s9, %s12_s9  }
   0x2   : > { %p113_p1 = scmp.lt.s32.totalorder %s551_s9, 5 }
   0x4   : > { %p114_p2 = pnand %p471_p0, %p113_p1 }
   0x5   : > { %s472_s13 = sshll.u32 (!%p114_p2), %s574_s10, 4  ;;  %s491_s14 = sshll.u32 (!%p114_p2), %s574_s10, 7 }
   0x6   : > { %117 = sbr.rel (%p114_p2) target bundleno = 306 (0x132), region = 28  ;;  %p135_p3 = scmp.lt.s32.totalorder (!%p114_p2), %s472_s13, 63 }
   0x7   : > { %s329_s15 = ssub.s32 (!%p114_p2), 512, %s491_s14  ;;  %p140_p5 = scmp.lt.s32.totalorder (!%p114_p2), %s574_s10, 3 }
   0x8   : > { %p330_p4 = scmp.lt.s32.totalorder (!%p114_p2), %s329_s15, 128 }
   0xb   : > { %v161_v0 = vld [vmem:[%s615_s1] sm:$0x3]  ;;  %vm227_vm0 = vcmask 1041408   ;;  %s618_s13 = smov (!%p135_p3, %s472_s13), 63  ;;  %s620_s15 = smov (!%p330_p4, %s329_s15), 128  ;;  %vm202_vm1 = vcmask 31744  }
   0xc   : > { %523 = vmatprep.subr.msk.bf16.mxu0 %vm227_vm0, %v161_v0  ;;  %v229_v1 = vsel %vm227_vm0, %v161_v0, 0  ;;  %524 = vmatprep.subr.msk.bf16.mxu1 %vm227_vm0, %v161_v0  ;;  %s473_s16 = sshll.u32 %s618_s13, 2  ;;  %s332_s20 = scvt.s32.f32 %s620_s15 }
   0xd   : > { %504 = vmatpush3.bf16.msra.mxu0 %v229_v1  ;;  %522 = vmatpush3.bf16.msra.mxu1 %v229_v1  ;;  %s138_s19 = scalar_lea.vmem %s614_s0, %s473_s16  ;;  %s622_s10 = smov (!%p140_p5, %s574_s10), 3 }
   0xe   : > { %v535_v2 = vld [vmem:[%s138_s19] sm:$0xff]   ;;  %v536_v3 = vld [vmem:[%s138_s19 + $0x8] sm:$0xff]   ;;  %v354_v4 = vstv %s332_s20  ;;  %v537_v5 = vld [vmem:[%s138_s19 + $0x10] sm:$0xff]   ;;  %s474_s21 = sshll.u32 %s622_s10, 1 }
   0xf   : > { %505 = vmatprep.mubr.msk.bf16.mxu0 %vm202_vm1, %v535_v2  ;;  %543 = vrcp.f32 %v354_v4  ;;  %v539_v6 = vld [vmem:[%s138_s19 + $0x20] sm:$0xff]   ;;  %v540_v7 = vld [vmem:[%s138_s19 + $0x28] sm:$0xff]   ;;  %v541_v8 = vld [vmem:[%s138_s19 + $0x30] sm:$0xff]   ;;  %s605_s25 = scalar_lea.vmem %s616_s2, %s474_s21 }
  0x10   : > { %506 = vmatmul.mubr.msk.bf16.vlgmr.msra.gmra.mxu0 %vm202_vm1, %v536_v3  ;;  %513 = vmatprep.mubr.msk.bf16.mxu1 %vm202_vm1, %v539_v6  ;;  %v538_v9 = vld [vmem:[%s138_s19 + $0x18] sm:$0xff]  }
  0x11   : > { %509 = vmatprep.mubr.msk.bf16.mxu0 %vm202_vm1, %v537_v5  ;;  %514 = vmatmul.mubr.msk.bf16.vlgmr.msra.gmra.mxu1 %vm202_vm1, %v540_v7  ;;  %v542_v10 = vld [vmem:[%s138_s19 + $0x38] sm:$0xff]  }
  0x12   : > { %517 = vmatprep.mubr.msk.bf16.mxu1 %vm202_vm1, %v541_v8 }
  0x18   : > { %510 = vmatmul.mubr.msk.bf16.gmra.mxu0 %vm202_vm1, %v538_v9 }
  0x19   : > { %518 = vmatmul.mubr.msk.bf16.gmra.mxu1 %vm202_vm1, %v542_v10 }
  0x1c   : > { %v544_v11 = vpop.eup %543 }
  0x1d   : > { %525 = vpush %v544_v11 }
  0x4e   : > { %s526_s22 = spop %525 }
  0x4f   : > { %v357_v48 = vstv %s526_s22 }
  0xd0   : > { %v507_v12 = vpop.f32.mrf.mxu0 }
  0xd1   : > { %v594_v15 = vpop.f32.mrf.mxu1 }
  0xd2   : > { %v265_v13 = vpop.f32.mrf.mxu0 }
  0xd3   : > { %v297_v17 = vpop.f32.mrf.mxu1 }
  0xd4   : > { %v508_v14 = vpop.f32.mrf.mxu0 }
  0xd5   : > { %v516_v22 = vpop.f32.mrf.mxu1 }
  0xd6   : > { %v268_v16 = vpop.f32.mrf.mxu0 }
  0xd7   : > { %v333_v18 = vadd.f32 %v268_v16, %v265_v13  ;;  %v300_v27 = vpop.f32.mrf.mxu1 }
  0xd8   : > { %v511_v19 = vpop.f32.mrf.mxu0 }
  0xd9   : > { %v334_v20 = vadd.f32 %v507_v12, %v333_v18  ;;  %v596_v30 = vpop.f32.mrf.mxu1 }
  0xda   : > { %v281_v21 = vpop.f32.mrf.mxu0 }
  0xdb   : > { %v335_v23 = vadd.f32 %v508_v14, %v334_v20  ;;  %v313_v33 = vpop.f32.mrf.mxu1 }
  0xdc   : > { %v512_v24 = vpop.f32.mrf.mxu0 }
  0xdd   : > { %v336_v25 = vadd.f32 %v335_v23, %v281_v21  ;;  %v520_v36 = vpop.f32.mrf.mxu1 }
  0xde   : > { %v284_v26 = vpop.f32.mrf.mxu0 }
  0xdf   : > { %v337_v28 = vadd.f32 %v336_v25, %v284_v26  ;;  %v316_v39 = vpop.f32.mrf.mxu1 }
  0xe1   : > { %v338_v29 = vadd.f32 %v511_v19, %v337_v28 }
  0xe3   : > { %v339_v31 = vadd.f32 %v512_v24, %v338_v29 }
  0xe5   : > { %v340_v32 = vadd.f32 %v339_v31, %v297_v17 }
  0xe7   : > { %v341_v34 = vadd.f32 %v340_v32, %v300_v27 }
  0xe9   : > { %v342_v35 = vadd.f32 %v594_v15, %v341_v34 }
  0xeb   : > { %v343_v37 = vadd.f32 %v516_v22, %v342_v35 }
  0xed   : > { %v344_v38 = vadd.f32 %v343_v37, %v313_v33 }
  0xef   : > { %v345_v40 = vadd.f32 %v344_v38, %v316_v39 }
  0xf1   : > { %v346_v41 = vadd.f32 %v596_v30, %v345_v40 }
  0xf3   : > { %v347_v42 = vadd.f32 %v520_v36, %v346_v41 }
  0xf5   : > { %v348_v43 = vrot.slane %v347_v42, 4 }
  0xf7   : > { %v349_v44 = vadd.f32 %v348_v43, %v347_v42 }
  0xf9   : > { %v350_v45 = vrot.slane %v349_v44, 2 }
  0xfb   : > { %v351_v46 = vadd.f32 %v350_v45, %v349_v44 }
  0xfd   : > { %v352_v47 = vrot.slane %v351_v46, 1 }
  0xff   : > { %v353_v49 = vadd.f32 %v352_v47, %v351_v46 }
 0x101   : > { %v358_v50 = vmul.f32 %v357_v48, %v353_v49  ;;  %412 = vst [vmem:[%s605_s25] sm:$0x1] %v353_v49 }
 0x103   : > { %v359_v51 = vsub.f32 %v265_v13, %v358_v50  ;;  %v360_v52 = vsub.f32 %v268_v16, %v358_v50  ;;  %v361_v53 = vsub.f32 %v507_v12, %v358_v50  ;;  %v362_v56 = vsub.f32 %v508_v14, %v358_v50 }
 0x104   : > { %v363_v57 = vsub.f32 %v281_v21, %v358_v50  ;;  %v364_v60 = vsub.f32 %v284_v26, %v358_v50  ;;  %v365_v63 = vsub.f32 %v511_v19, %v358_v50  ;;  %v366_v2 = vsub.f32 %v512_v24, %v358_v50 }
 0x105   : > { %v375_v54 = vmul.f32 %v359_v51, %v359_v51  ;;  %v376_v55 = vmul.f32 %v360_v52, %v360_v52  ;;  %v377_v58 = vmul.f32 %v361_v53, %v361_v53  ;;  %v378_v61 = vmul.f32 %v362_v56, %v362_v56 }
 0x106   : > { %v379_v0 = vmul.f32 %v363_v57, %v363_v57  ;;  %v380_v3 = vmul.f32 %v364_v60, %v364_v60  ;;  %v367_v5 = vsub.f32 %v297_v17, %v358_v50  ;;  %v381_v6 = vmul.f32 %v365_v63, %v365_v63 }
 0x107   : > { %v391_v59 = vadd.f32 %v376_v55, %v375_v54  ;;  %v368_v8 = vsub.f32 %v300_v27, %v358_v50  ;;  %v382_v9 = vmul.f32 %v366_v2, %v366_v2  ;;  %v369_v11 = vsub.f32 %v594_v15, %v358_v50 }
 0x108   : > { %v383_v12 = vmul.f32 %v367_v5, %v367_v5  ;;  %v370_v14 = vsub.f32 %v516_v22, %v358_v50  ;;  %v371_v20 = vsub.f32 %v313_v33, %v358_v50  ;;  %v372_v23 = vsub.f32 %v316_v39, %v358_v50 }
 0x109   : > { %v392_v62 = vadd.f32 %v391_v59, %v377_v58  ;;  %v384_v16 = vmul.f32 %v368_v8, %v368_v8  ;;  %v385_v19 = vmul.f32 %v369_v11, %v369_v11  ;;  %v373_v17 = vsub.f32 %v596_v30, %v358_v50 }
 0x10a   : > { %v386_v24 = vmul.f32 %v370_v14, %v370_v14  ;;  %v387_v26 = vmul.f32 %v371_v20, %v371_v20  ;;  %v374_v28 = vsub.f32 %v520_v36, %v358_v50  ;;  %v388_v29 = vmul.f32 %v372_v23, %v372_v23 }
 0x10b   : > { %v393_v1 = vadd.f32 %v392_v62, %v378_v61  ;;  %v389_v15 = vmul.f32 %v373_v17, %v373_v17 }
 0x10c   : > { %v390_v34 = vmul.f32 %v374_v28, %v374_v28 }
 0x10d   : > { %v394_v4 = vadd.f32 %v393_v1, %v379_v0 }
 0x10f   : > { %v395_v7 = vadd.f32 %v394_v4, %v380_v3 }
 0x111   : > { %v396_v10 = vadd.f32 %v395_v7, %v381_v6 }
 0x113   : > { %v397_v13 = vadd.f32 %v396_v10, %v382_v9 }
 0x115   : > { %v398_v18 = vadd.f32 %v397_v13, %v383_v12 }
 0x117   : > { %v399_v21 = vadd.f32 %v398_v18, %v384_v16 }
 0x119   : > { %v400_v25 = vadd.f32 %v399_v21, %v385_v19 }
 0x11b   : > { %v401_v27 = vadd.f32 %v400_v25, %v386_v24 }
 0x11d   : > { %v402_v31 = vadd.f32 %v401_v27, %v387_v26 }
 0x11f   : > { %v403_v32 = vadd.f32 %v402_v31, %v388_v29 }
 0x121   : > { %v404_v22 = vadd.f32 %v403_v32, %v389_v15 }
 0x123   : > { %v405_v35 = vadd.f32 %v404_v22, %v390_v34 }
 0x125   : > { %v406_v37 = vrot.slane %v405_v35, 4 }
 0x127   : > { %v407_v33 = vadd.f32 %v406_v37, %v405_v35 }
 0x129   : > { %v408_v38 = vrot.slane %v407_v33, 2 }
 0x12b   : > { %v409_v40 = vadd.f32 %v408_v38, %v407_v33 }
 0x12d   : > { %v410_v39 = vrot.slane %v409_v40, 1 }
 0x12f   : > { %v411_v41 = vadd.f32 %v410_v39, %v409_v40 }
 0x131   : > { %413 = vst [vmem:[%s605_s25 + $0x1] sm:$0x1] %v411_v41 }
 0x132 PF: > { %s12_s9 = sadd.s32 1, %s551_s9  }
 0x133   : > { %p9_p6 = scmp.ge.s32.totalorder %s12_s9, 6  }
 0x135   :  { %11 = sbr.rel (!%p9_p6) target bundleno = 1 (0x1), region = 58 }

// kernel: generator_block.3
= control target key start
LH: loop header
LB: loop body
LE: loop exit
PB: predicated region body
PF: predicated region fallthrough
CT: control target
= control target key end

     0   :  { %s628_s15 = smov 0   ;;  %s720_s0 = inlined_call_operand.vmem [shape: bf16[512,4], index: 0, kind: input, shape index: {}]   ;;  %s721_s1 = inlined_call_operand.vmem [shape: bf16[4,128], index: 1, kind: input, shape index: {}]   ;;  %s722_s2 = inlined_call_operand.vmem [shape: f32[1,128], index: 2, kind: input, shape index: {}]   ;;  %s723_s3 = inlined_call_operand.vmem [shape: f32[1,128], index: 3, kind: input, shape index: {}]   ;;  %s724_s4 = inlined_call_operand.vmem [shape: f32[512,128], index: 4, kind: output, shape index: {}]  }
   0x1 LB: > { %s519_s16 = sadd.s32 4294967295, %s601_s15   ;;  %p523_p0 = scmp.ge.s32.totalorder %s601_s15, 1  ;;  %s601_s15 = sphi %s628_s15, %s14_s15  }
   0x2   : > { %p163_p1 = scmp.lt.s32.totalorder %s601_s15, 5 }
   0x4   : > { %p164_p2 = pnand %p523_p0, %p163_p1 }
   0x5   : > { %s524_s19 = sshll.u32 (!%p164_p2), %s519_s16, 4 }
   0x6   : > { %167 = sbr.rel (%p164_p2) target bundleno = 231 (0xe7), region = 36  ;;  %p190_p3 = scmp.lt.s32.totalorder (!%p164_p2), %s524_s19, 63 }
   0xb   : > { %v218_v0 = vld [vmem:[%s721_s1] sm:$0x3]  ;;  %vm284_vm0 = vcmask 1041408   ;;  %s726_s19 = smov (!%p190_p3, %s524_s19), 63  ;;  %vm259_vm1 = vcmask 31744  }
   0xc   : > { %577 = vmatprep.subr.msk.bf16.mxu0 %vm284_vm0, %v218_v0  ;;  %578 = vmatprep.subr.msk.bf16.mxu1 %vm284_vm0, %v218_v0  ;;  %v286_v1 = vsel %vm284_vm0, %v218_v0, 0  ;;  %s525_s20 = sshll.u32 %s726_s19, 2  ;;  %v656_v10 = vld [vmem:[%s722_s2] ss:$0 sm:$0xff]  ;;  %s527_s28 = sshll.u32 %s726_s19, 3 }
   0xd   : > { %558 = vmatpush3.bf16.msra.mxu0 %v286_v1  ;;  %576 = vmatpush3.bf16.msra.mxu1 %v286_v1  ;;  %s193_s23 = scalar_lea.vmem %s720_s0, %s525_s20  ;;  %v661_v12 = vld [vmem:[%s723_s3] ss:$0 sm:$0xff]  ;;  %s671_s5 = scalar_lea.vmem %s724_s4, %s527_s28 }
   0xe   : > { %v587_v2 = vld [vmem:[%s193_s23] sm:$0xff]   ;;  %v589_v4 = vld [vmem:[%s193_s23 + $0x8] sm:$0xff]   ;;  %v591_v6 = vld [vmem:[%s193_s23 + $0x10] sm:$0xff]  }
   0xf   : > { %v588_v3 = vld [vmem:[%s193_s23 + $0x20] sm:$0xff]   ;;  %559 = vmatprep.mubr.msk.bf16.mxu0 %vm259_vm1, %v587_v2  ;;  %v590_v5 = vld [vmem:[%s193_s23 + $0x28] sm:$0xff]   ;;  %v592_v7 = vld [vmem:[%s193_s23 + $0x30] sm:$0xff]  }
  0x10   : > { %567 = vmatprep.mubr.msk.bf16.mxu1 %vm259_vm1, %v588_v3  ;;  %560 = vmatmul.mubr.msk.bf16.vlgmr.msra.gmra.mxu0 %vm259_vm1, %v589_v4  ;;  %v593_v8 = vld [vmem:[%s193_s23 + $0x18] sm:$0xff]  }
  0x11   : > { %568 = vmatmul.mubr.msk.bf16.vlgmr.msra.gmra.mxu1 %vm259_vm1, %v590_v5  ;;  %563 = vmatprep.mubr.msk.bf16.mxu0 %vm259_vm1, %v591_v6  ;;  %v594_v9 = vld [vmem:[%s193_s23 + $0x38] sm:$0xff]  }
  0x12   : > { %571 = vmatprep.mubr.msk.bf16.mxu1 %vm259_vm1, %v592_v7 }
  0x18   : > { %564 = vmatmul.mubr.msk.bf16.gmra.mxu0 %vm259_vm1, %v593_v8 }
  0x19   : > { %572 = vmatmul.mubr.msk.bf16.gmra.mxu1 %vm259_vm1, %v594_v9 }
  0xd0   : > { %v561_v11 = vpop.f32.mrf.mxu0 }
  0xd1   : > { %v394_v13 = vmul.f32 %v561_v11, %v656_v10  ;;  %v569_v14 = vpop.f32.mrf.mxu1 }
  0xd2   : > { %v402_v15 = vmul.f32 %v569_v14, %v656_v10  ;;  %v322_v16 = vpop.f32.mrf.mxu0 }
  0xd3   : > { %v417_v17 = vadd.f32 %v661_v12, %v394_v13  ;;  %v392_v18 = vmul.f32 %v656_v10, %v322_v16  ;;  %v354_v19 = vpop.f32.mrf.mxu1 }
  0xd4   : > { %v425_v20 = vadd.f32 %v661_v12, %v402_v15  ;;  %v400_v21 = vmul.f32 %v656_v10, %v354_v19  ;;  %v562_v22 = vpop.f32.mrf.mxu0 }
  0xd5   : > { %v433_v23 = vmax.f32 %v417_v17, 0.0  ;;  %v415_v24 = vadd.f32 %v661_v12, %v392_v18  ;;  %v395_v25 = vmul.f32 %v562_v22, %v656_v10  ;;  %v570_v26 = vpop.f32.mrf.mxu1 }
  0xd6   : > { %v441_v27 = vmax.f32 %v425_v20, 0.0  ;;  %v423_v28 = vadd.f32 %v661_v12, %v400_v21  ;;  %v403_v29 = vmul.f32 %v570_v26, %v656_v10  ;;  %v325_v30 = vpop.f32.mrf.mxu0 }
  0xd7   : > { %449 = vst [vmem:[%s671_s5 + $0x10] sm:$0xff] %v433_v23  ;;  %v431_v31 = vmax.f32 %v415_v24, 0.0  ;;  %v418_v32 = vadd.f32 %v661_v12, %v395_v25  ;;  %v393_v33 = vmul.f32 %v656_v10, %v325_v30  ;;  %v357_v34 = vpop.f32.mrf.mxu1 }
  0xd8   : > { %457 = vst [vmem:[%s671_s5 + $0x50] sm:$0xff] %v441_v27  ;;  %v439_v35 = vmax.f32 %v423_v28, 0.0  ;;  %v426_v36 = vadd.f32 %v661_v12, %v403_v29  ;;  %v401_v37 = vmul.f32 %v656_v10, %v357_v34  ;;  %v565_v38 = vpop.f32.mrf.mxu0 }
  0xd9   : > { %447 = vst [vmem:[%s671_s5] sm:$0xff] %v431_v31  ;;  %v434_v39 = vmax.f32 %v418_v32, 0.0  ;;  %v416_v40 = vadd.f32 %v661_v12, %v393_v33  ;;  %v398_v41 = vmul.f32 %v565_v38, %v656_v10  ;;  %v573_v42 = vpop.f32.mrf.mxu1 }
  0xda   : > { %455 = vst [vmem:[%s671_s5 + $0x40] sm:$0xff] %v439_v35  ;;  %v442_v43 = vmax.f32 %v426_v36, 0.0  ;;  %v424_v44 = vadd.f32 %v661_v12, %v401_v37  ;;  %v406_v45 = vmul.f32 %v573_v42, %v656_v10  ;;  %v338_v46 = vpop.f32.mrf.mxu0 }
  0xdb   : > { %450 = vst [vmem:[%s671_s5 + $0x18] sm:$0xff] %v434_v39  ;;  %v432_v47 = vmax.f32 %v416_v40, 0.0  ;;  %v421_v48 = vadd.f32 %v661_v12, %v398_v41  ;;  %v396_v49 = vmul.f32 %v656_v10, %v338_v46  ;;  %v370_v50 = vpop.f32.mrf.mxu1 }
  0xdc   : > { %458 = vst [vmem:[%s671_s5 + $0x58] sm:$0xff] %v442_v43  ;;  %v440_v51 = vmax.f32 %v424_v44, 0.0  ;;  %v429_v52 = vadd.f32 %v661_v12, %v406_v45  ;;  %v404_v53 = vmul.f32 %v656_v10, %v370_v50  ;;  %v566_v54 = vpop.f32.mrf.mxu0 }
  0xdd   : > { %448 = vst [vmem:[%s671_s5 + $0x8] sm:$0xff] %v432_v47  ;;  %v437_v55 = vmax.f32 %v421_v48, 0.0  ;;  %v419_v56 = vadd.f32 %v661_v12, %v396_v49  ;;  %v399_v57 = vmul.f32 %v566_v54, %v656_v10  ;;  %v574_v58 = vpop.f32.mrf.mxu1 }
  0xde   : > { %456 = vst [vmem:[%s671_s5 + $0x48] sm:$0xff] %v440_v51  ;;  %v445_v59 = vmax.f32 %v429_v52, 0.0  ;;  %v427_v60 = vadd.f32 %v661_v12, %v404_v53  ;;  %v407_v61 = vmul.f32 %v574_v58, %v656_v10  ;;  %v341_v62 = vpop.f32.mrf.mxu0 }
  0xdf   : > { %453 = vst [vmem:[%s671_s5 + $0x30] sm:$0xff] %v437_v55  ;;  %v435_v63 = vmax.f32 %v419_v56, 0.0  ;;  %v422_v0 = vadd.f32 %v661_v12, %v399_v57  ;;  %v397_v1 = vmul.f32 %v656_v10, %v341_v62  ;;  %v373_v2 = vpop.f32.mrf.mxu1 }
  0xe0   : > { %461 = vst [vmem:[%s671_s5 + $0x70] sm:$0xff] %v445_v59  ;;  %v443_v3 = vmax.f32 %v427_v60, 0.0  ;;  %v430_v4 = vadd.f32 %v661_v12, %v407_v61  ;;  %v405_v5 = vmul.f32 %v656_v10, %v373_v2 }
  0xe1   : > { %451 = vst [vmem:[%s671_s5 + $0x20] sm:$0xff] %v435_v63  ;;  %v438_v6 = vmax.f32 %v422_v0, 0.0  ;;  %v420_v7 = vadd.f32 %v661_v12, %v397_v1 }
  0xe2   : > { %459 = vst [vmem:[%s671_s5 + $0x60] sm:$0xff] %v443_v3  ;;  %v446_v8 = vmax.f32 %v430_v4, 0.0  ;;  %v428_v9 = vadd.f32 %v661_v12, %v405_v5 }
  0xe3   : > { %454 = vst [vmem:[%s671_s5 + $0x38] sm:$0xff] %v438_v6  ;;  %v436_v11 = vmax.f32 %v420_v7, 0.0 }
  0xe4   : > { %462 = vst [vmem:[%s671_s5 + $0x78] sm:$0xff] %v446_v8  ;;  %v444_v13 = vmax.f32 %v428_v9, 0.0 }
  0xe5   : > { %452 = vst [vmem:[%s671_s5 + $0x28] sm:$0xff] %v436_v11 }
  0xe6   : > { %460 = vst [vmem:[%s671_s5 + $0x68] sm:$0xff] %v444_v13 }
  0xe7 PF: > { %s14_s15 = sadd.s32 1, %s601_s15  }
  0xe8   : > { %p11_p4 = scmp.ge.s32.totalorder %s14_s15, 6  }
  0xea   :  { %13 = sbr.rel (!%p11_p4) target bundleno = 1 (0x1), region = 66 }

</bundles_post_ra>
